<compile_context>
chip_gen: v6e
topology: v6e:2x2x1
jax: 0.10.0
libtpu: 0.0.40
codegen_flags: <defaults>
</compile_context>

<pallas_src>
import functools

import jax
import jax.numpy as jnp
from jax.experimental import pallas as pl
from jax.experimental.pallas import tpu as pltpu


# ----------------------------------------------------------------------------
# Fused kernel: conv stem (matmul+bias+ReLU) + global-avg-pool + last_linear
#   grid = (N, HW // TH)
#     p_ref    : (1, TH, Kp)  bf16   im2col patch tile of image n
#     cw_ref   : (Kp, C)      bf16   conv weight (K zero-padded to Kp)
#     cb_ref   : (1, C)       f32    conv bias
#     fw_ref   : (C, NCp)     bf16   fc weight  (classes zero-padded to NCp)
#     fb_ref   : (1, NCp)     f32    fc bias    (padded)
#     o_ref    : (1, 1, NCp)  f32    logits for image n (padded classes)
#     pool_acc : (1, C)       f32    running spatial sum (VMEM scratch)
# ----------------------------------------------------------------------------
def fused_stem_head_kernel(p_ref, cw_ref, cb_ref, fw_ref, fb_ref, o_ref,
                           pool_acc, *, inv_hw):
    k = pl.program_id(1)

    @pl.when(k == 0)
    def _():
        pool_acc[...] = jnp.zeros_like(pool_acc)

    # Conv stem tile on the MXU (bf16 in, f32 accumulate), bias + ReLU on VPU.
    acc = jnp.dot(p_ref[0], cw_ref[...], preferred_element_type=jnp.float32)
    acc = jnp.maximum(acc + cb_ref[...], 0.0)                        # (TH, C) f32

    # Partial global-average-pool: accumulate the spatial sum in f32.
    pool_acc[...] += jnp.sum(acc, axis=0, keepdims=True)             # (1, C)

    @pl.when(k == pl.num_programs(1) - 1)
    def _():
        pooled = pool_acc[...] * inv_hw                              # (1, C) f32
        logits = jnp.dot(pooled.astype(fw_ref.dtype), fw_ref[...],
                         preferred_element_type=jnp.float32)         # (1, NCp)
        o_ref[0] = (logits + fb_ref[...]).astype(o_ref.dtype)


# ----------------------------------------------------------------------------
# JAX glue
# ----------------------------------------------------------------------------
def im2col_3x3_same(x_nhwc):
    """3x3 'same' conv patches: [N, H, W, Cin] -> [N, H*W, 9*Cin]."""
    N, H, W, Cin = x_nhwc.shape
    xp = jnp.pad(x_nhwc, ((0, 0), (1, 1), (1, 1), (0, 0)))
    taps = [xp[:, dh:dh + H, dw:dw + W, :] for dh in range(3) for dw in range(3)]
    patches = jnp.concatenate(taps, axis=-1)                 # [N, H, W, 9*Cin]
    return patches.reshape(N, H * W, 9 * Cin)


def wrapper_model_forward(x_nchw, params, *, tile_hw=128, num_classes=200):
    N, Cin, H, W = x_nchw.shape
    HW = H * W

    x_nhwc = jnp.transpose(x_nchw, (0, 2, 3, 1))             # NCHW -> NHWC
    patches = im2col_3x3_same(x_nhwc)                        # [N, HW, 9*Cin] f32

    K = patches.shape[-1]
    Kp, C = params["conv_w"].shape                           # padded K, feature_num
    NCp = params["fc_w"].shape[1]                            # padded classes

    # Pad contraction dim to a lane-friendly width, cast matmul input to bf16.
    patches = jnp.pad(patches, ((0, 0), (0, 0), (0, Kp - K))).astype(jnp.bfloat16)

    TH = tile_hw if HW % tile_hw == 0 else HW                # spatial tile (rows)
    grid = (N, HW // TH)

    out = pl.pallas_call(
        functools.partial(fused_stem_head_kernel, inv_hw=1.0 / HW),
        out_shape=jax.ShapeDtypeStruct((N, 1, NCp), jnp.float32),
        grid_spec=pltpu.PrefetchScalarGridSpec(
            num_scalar_prefetch=0,
            grid=grid,
            in_specs=[
                pl.BlockSpec((1, TH, Kp), lambda n, k: (n, k, 0)),   # patch tile
                pl.BlockSpec((Kp, C), lambda n, k: (0, 0)),          # conv_w
                pl.BlockSpec((1, C), lambda n, k: (0, 0)),           # conv_b
                pl.BlockSpec((C, NCp), lambda n, k: (0, 0)),         # fc_w
                pl.BlockSpec((1, NCp), lambda n, k: (0, 0)),         # fc_b
            ],
            out_specs=pl.BlockSpec((1, 1, NCp), lambda n, k: (n, 0, 0)),
            scratch_shapes=[pltpu.VMEM((1, C), jnp.float32)],
        ),
        compiler_params=pltpu.CompilerParams(
            dimension_semantics=("parallel", "arbitrary")),
    )(patches, params["conv_w"], params["conv_b"],
      params["fc_w"], params["fc_b"])

    return out[:, 0, :num_classes]                           # drop class padding


def init_params(key, cin=3, feature_num=128, num_classes=200,
                k_pad=32, class_pad=256):
    K = 9 * cin
    k1, k2, k3, k4 = jax.random.split(key, 4)
    conv_w = jax.random.normal(k1, (K, feature_num), jnp.float32) * 0.05
    conv_b = jax.random.normal(k2, (1, feature_num), jnp.float32) * 0.01
    fc_w = jax.random.normal(k3, (feature_num, num_classes), jnp.float32) * 0.02
    fc_b = jax.random.normal(k4, (1, num_classes), jnp.float32) * 0.01

    kernel_params = {
        "conv_w": jnp.pad(conv_w, ((0, k_pad - K), (0, 0))).astype(jnp.bfloat16),
        "conv_b": conv_b,
        "fc_w": jnp.pad(fc_w, ((0, 0), (0, class_pad - num_classes))
                        ).astype(jnp.bfloat16),
        "fc_b": jnp.pad(fc_b, ((0, 0), (0, class_pad - num_classes))),
    }
    ref_params = {"conv_w": conv_w, "conv_b": conv_b, "fc_w": fc_w, "fc_b": fc_b}
    return kernel_params, ref_params


def reference_forward(x_nchw, ref_params):
    """Pure-jnp reference mirroring the kernel's bf16-in / f32-accumulate math."""
    N, Cin, H, W = x_nchw.shape
    x_nhwc = jnp.transpose(x_nchw, (0, 2, 3, 1))
    patches = im2col_3x3_same(x_nhwc)                        # [N, HW, K] f32
    feat = jnp.dot(patches.astype(jnp.bfloat16),
                   ref_params["conv_w"].astype(jnp.bfloat16),
                   preferred_element_type=jnp.float32)
    feat = jnp.maximum(feat + ref_params["conv_b"], 0.0)     # [N, HW, C]
    pooled = feat.mean(axis=1)                               # [N, C]
    logits = jnp.dot(pooled.astype(jnp.bfloat16),
                     ref_params["fc_w"].astype(jnp.bfloat16),
                     preferred_element_type=jnp.float32)
    return logits + ref_params["fc_b"]


if __name__ == "__main__":
    key = jax.random.PRNGKey(0)
    kx, kp = jax.random.split(key)

    # small demo shapes: batch=2, 3 input channels, 16x16 spatial -> HW=256
    x = jax.random.normal(kx, (2, 3, 16, 16), jnp.float32)
    params, ref_params = init_params(kp)

    out = jax.jit(wrapper_model_forward)(x, params)
    out = jax.block_until_ready(out)

    ref = reference_forward(x, ref_params)
    assert out.shape == (2, 200), out.shape
    max_err = float(jnp.max(jnp.abs(out - ref)))
    assert jnp.allclose(out, ref, atol=5e-3, rtol=5e-3), max_err

    print("KERNEL_OK")
</pallas_src>

<mosaic_0001>
module attributes {stable_mosaic.version = 11 : i64} {
  func.func @fused_stem_head_kernel(%arg0: i32, %arg1: i32, %arg2: memref<1x128x32xbf16, #tpu.memory_space<vmem>>, %arg3: memref<32x128xbf16, #tpu.memory_space<vmem>>, %arg4: memref<1x128xf32, #tpu.memory_space<vmem>>, %arg5: memref<128x256xbf16, #tpu.memory_space<vmem>>, %arg6: memref<1x256xf32, #tpu.memory_space<vmem>>, %arg7: memref<1x1x256xf32, #tpu.memory_space<vmem>>, %arg8: memref<1x128xf32, #tpu.memory_space<vmem>>) attributes {dimension_semantics = [#tpu.dimension_semantics<parallel>, #tpu.dimension_semantics<arbitrary>], iteration_bounds = array<i64: 2, 2>, scalar_prefetch = 0 : i64, scratch_operands = 1 : i64, tpu.core_type = #tpu.core_type<tc>, window_params = [{transform_indices = @transform_0, window_bounds = array<i64: 1, 128, 32>}, {pipeline_mode = #tpu.pipeline_mode<synchronous>, transform_indices = @transform_1, window_bounds = array<i64: 32, 128>}, {pipeline_mode = #tpu.pipeline_mode<synchronous>, transform_indices = @transform_2, window_bounds = array<i64: 1, 128>}, {pipeline_mode = #tpu.pipeline_mode<synchronous>, transform_indices = @transform_3, window_bounds = array<i64: 128, 256>}, {pipeline_mode = #tpu.pipeline_mode<synchronous>, transform_indices = @transform_4, window_bounds = array<i64: 1, 256>}, {transform_indices = @transform_5, window_bounds = array<i64: 1, 1, 256>}]} {
    %c0_i32 = arith.constant 0 : i32
    %0 = arith.cmpi eq, %arg1, %c0_i32 : i32
    %1 = arith.extui %0 : i1 to i32
    %c0_i32_0 = arith.constant 0 : i32
    %2 = arith.cmpi ne, %1, %c0_i32_0 : i32
    scf.if %2 {
      %cst_14 = arith.constant 0.000000e+00 : f32
      %20 = vector.broadcast %cst_14 : f32 to vector<1x128xf32>
      %c0_15 = arith.constant 0 : index
      %c0_16 = arith.constant 0 : index
      %21 = vector.load %arg8[%c0_15, %c0_16] : memref<1x128xf32, #tpu.memory_space<vmem>>, vector<1x128xf32>
      tpu.vector_store %arg8[%c0_15, %c0_16], %20 {strides = array<i32>} : memref<1x128xf32, #tpu.memory_space<vmem>>, vector<1x128xf32>,
    } else {
    }
    %c0 = arith.constant 0 : index
    %c0_1 = arith.constant 0 : index
    %c0_2 = arith.constant 0 : index
    %3 = vector.load %arg2[%c0, %c0_1, %c0_2] : memref<1x128x32xbf16, #tpu.memory_space<vmem>>, vector<1x128x32xbf16>
    %4 = vector.shape_cast %3 : vector<1x128x32xbf16> to vector<128x32xbf16>
    %c0_3 = arith.constant 0 : index
    %c0_4 = arith.constant 0 : index
    %5 = vector.load %arg3[%c0_3, %c0_4] : memref<32x128xbf16, #tpu.memory_space<vmem>>, vector<32x128xbf16>
    %cst = arith.constant dense<0.000000e+00> : vector<128x128xf32>
    %6 = tpu.matmul %4, %5, %cst {dimension_numbers = #tpu.dot_dimension_numbers<[1], [0], [0], [1], [0, 0, 1, 1], [], []>} : vector<128x32xbf16>, vector<32x128xbf16>, vector<128x128xf32> -> vector<128x128xf32>
    %c0_5 = arith.constant 0 : index
    %c0_6 = arith.constant 0 : index
    %7 = vector.load %arg4[%c0_5, %c0_6] : memref<1x128xf32, #tpu.memory_space<vmem>>, vector<1x128xf32>
    %8 = vector.broadcast %7 : vector<1x128xf32> to vector<128x128xf32>
    %9 = arith.addf %6, %8 : vector<128x128xf32>
    %cst_7 = arith.constant 0.000000e+00 : f32
    %10 = vector.broadcast %cst_7 : f32 to vector<128x128xf32>
    %11 = arith.maximumf %9, %10 : vector<128x128xf32>
    %c0_8 = arith.constant 0 : index
    %c0_9 = arith.constant 0 : index
    %12 = vector.load %arg8[%c0_8, %c0_9] : memref<1x128xf32, #tpu.memory_space<vmem>>, vector<1x128xf32>
    %cst_10 = arith.constant dense<0.000000e+00> : vector<128xf32>
    %13 = vector.multi_reduction <add>, %11, %cst_10 [0] : vector<128x128xf32> to vector<128xf32>
    %14 = vector.shape_cast %13 : vector<128xf32> to vector<1x128xf32>
    %15 = arith.addf %12, %14 : vector<1x128xf32>
    %c0_11 = arith.constant 0 : index
    %c0_12 = arith.constant 0 : index
    %16 = vector.load %arg8[%c0_11, %c0_12] : memref<1x128xf32, #tpu.memory_space<vmem>>, vector<1x128xf32>
    tpu.vector_store %arg8[%c0_11, %c0_12], %15 {strides = array<i32>} : memref<1x128xf32, #tpu.memory_space<vmem>>, vector<1x128xf32>,
    %c1_i32 = arith.constant 1 : i32
    %17 = arith.cmpi eq, %arg1, %c1_i32 : i32
    %18 = arith.extui %17 : i1 to i32
    %c0_i32_13 = arith.constant 0 : i32
    %19 = arith.cmpi ne, %18, %c0_i32_13 : i32
    scf.if %19 {
      %c0_14 = arith.constant 0 : index
      %c0_15 = arith.constant 0 : index
      %20 = vector.load %arg8[%c0_14, %c0_15] : memref<1x128xf32, #tpu.memory_space<vmem>>, vector<1x128xf32>
      %cst_16 = arith.constant 3.906250e-03 : f32
      %21 = vector.broadcast %cst_16 : f32 to vector<1x128xf32>
      %22 = arith.mulf %20, %21 : vector<1x128xf32>
      %23 = arith.truncf %22 : vector<1x128xf32> to vector<1x128xbf16>
      %c0_17 = arith.constant 0 : index
      %c0_18 = arith.constant 0 : index
      %24 = vector.load %arg5[%c0_17, %c0_18] : memref<128x256xbf16, #tpu.memory_space<vmem>>, vector<128x256xbf16>
      %cst_19 = arith.constant dense<0.000000e+00> : vector<1x256xf32>
      %25 = tpu.matmul %23, %24, %cst_19 {dimension_numbers = #tpu.dot_dimension_numbers<[1], [0], [0], [1], [0, 0, 1, 1], [], []>} : vector<1x128xbf16>, vector<128x256xbf16>, vector<1x256xf32> -> vector<1x256xf32>
      %c0_20 = arith.constant 0 : index
      %c0_21 = arith.constant 0 : index
      %26 = vector.load %arg6[%c0_20, %c0_21] : memref<1x256xf32, #tpu.memory_space<vmem>>, vector<1x256xf32>
      %27 = arith.addf %25, %26 : vector<1x256xf32>
      %c0_22 = arith.constant 0 : index
      %c0_23 = arith.constant 0 : index
      %c0_24 = arith.constant 0 : index
      %28 = vector.load %arg7[%c0_22, %c0_23, %c0_24] : memref<1x1x256xf32, #tpu.memory_space<vmem>>, vector<1x1x256xf32>
      %29 = vector.shape_cast %28 : vector<1x1x256xf32> to vector<1x256xf32>
      %30 = vector.shape_cast %27 : vector<1x256xf32> to vector<1x1x256xf32>
      tpu.vector_store %arg7[%c0_22, %c0_23, %c0_24], %30 {strides = array<i32>} : memref<1x1x256xf32, #tpu.memory_space<vmem>>, vector<1x1x256xf32>,
    } else {
    }
    return
  }
  func.func @transform_0(%arg0: i32, %arg1: i32) -> (i32, i32, i32) {
    %c0_i32 = arith.constant 0 : i32
    %c0_i32_0 = arith.constant 0 : i32
    return %arg0, %arg1, %c0_i32 : i32, i32, i32
  }
  func.func @transform_1(%arg0: i32, %arg1: i32) -> (i32, i32) {
    %c0_i32 = arith.constant 0 : i32
    %c0_i32_0 = arith.constant 0 : i32
    %c0_i32_1 = arith.constant 0 : i32
    return %c0_i32, %c0_i32_0 : i32, i32
  }
  func.func @transform_2(%arg0: i32, %arg1: i32) -> (i32, i32) {
    %c0_i32 = arith.constant 0 : i32
    %c0_i32_0 = arith.constant 0 : i32
    %c0_i32_1 = arith.constant 0 : i32
    return %c0_i32, %c0_i32_0 : i32, i32
  }
  func.func @transform_3(%arg0: i32, %arg1: i32) -> (i32, i32) {
    %c0_i32 = arith.constant 0 : i32
    %c0_i32_0 = arith.constant 0 : i32
    %c0_i32_1 = arith.constant 0 : i32
    return %c0_i32, %c0_i32_0 : i32, i32
  }
  func.func @transform_4(%arg0: i32, %arg1: i32) -> (i32, i32) {
    %c0_i32 = arith.constant 0 : i32
    %c0_i32_0 = arith.constant 0 : i32
    %c0_i32_1 = arith.constant 0 : i32
    return %c0_i32, %c0_i32_0 : i32, i32
  }
  func.func @transform_5(%arg0: i32, %arg1: i32) -> (i32, i32, i32) {
    %c0_i32 = arith.constant 0 : i32
    %c0_i32_0 = arith.constant 0 : i32
    %c0_i32_1 = arith.constant 0 : i32
    return %arg0, %c0_i32, %c0_i32_0 : i32, i32, i32
  }
}

</mosaic_0001>

<bundles_post_ra>
// kernel: wrapper_model_forward.1
= control target key start
LH: loop header
LB: loop body
LE: loop exit
PB: predicated region body
PF: predicated region fallthrough
CT: control target
= control target key end

     0   :  { %s979_s18 = smov 0   ;;  %s981_s19 = smov 0   ;;  %s1106_s0 = inlined_call_operand.vmem [shape: bf16[2,256,32], index: 0, kind: input, shape index: {}]   ;;  %s1107_s1 = inlined_call_operand.vmem [shape: bf16[32,128], index: 1, kind: input, shape index: {}]   ;;  %s1108_s2 = inlined_call_operand.vmem [shape: f32[1,128], index: 2, kind: input, shape index: {}]   ;;  %s1109_s3 = inlined_call_operand.vmem [shape: bf16[128,256], index: 3, kind: input, shape index: {}]   ;;  %s1110_s4 = inlined_call_operand.vmem [shape: f32[1,256], index: 4, kind: input, shape index: {}]   ;;  %s1111_s5 = inlined_call_operand.vmem [shape: f32[2,1,256], index: 5, kind: output, shape index: {}]  }
   0x1   :  { %s983_s20 = smov 0   ;;  %s985_s21 = smov 0  }
   0x2   :  { %s987_s22 = smov 0  }
   0x3 LB: > { %s24_s23 = sadd.s32 1, %s936_s20  ;;  %s27_s24 = sadd.s32 1, %s940_s21  ;;  %s944_s22 = sphi %s987_s22, %s15_s22   ;;  %s940_s21 = sphi %s985_s21, %s1115_s21   ;;  %s936_s20 = sphi %s983_s20, %s1114_s20   ;;  %s932_s19 = sphi %s981_s19, %s1113_s19   ;;  %s928_s18 = sphi %s979_s18, %s1112_s18  }
   0x4   : > { %p25_p0 = scmp.ge.s32.totalorder %s24_s23, 2  ;;  %p751_p1 = scmp.ge.s32.totalorder %s944_s22, 1 }
   0x5   : > { %p206_p2 = scmp.lt.s32.totalorder %s944_s22, 5 }
   0x6   : > { %s1117_s23 = smov (%p25_p0, %s24_s23), 0  ;;  %s1119_s24 = smov (!%p25_p0, %s27_s24), %s940_s21 }
   0x7   : > { %p207_p3 = pnand %p751_p1, %p206_p2  ;;  %p29_p4 = scmp.ge.s32.totalorder %s1119_s24, 2 }
   0x8   : > { %s752_s25 = sshll.u32 (!%p207_p3), %s928_s18, 4  ;;  %p238_p5 = scmp.lt.s32.totalorder (!%p207_p3), %s932_s19, 1 }
   0x9   : > { %s1121_s24 = smov (%p29_p4, %s1119_s24), 0  ;;  %210 = sbr.rel (%p207_p3) target bundleno = 518 (0x206), region = 40 }
   0xa   : > { %p240_p6 = scmp.lt.s32.totalorder (!%p207_p3), %s752_s25, 31  ;;  %p756_p7 = scmp.ne.s32.totalorder (!%p207_p3), %s928_s18, 0 }
   0xe   : > { %s1123_s19 = smov (!%p238_p5, %s932_s19), 1  ;;  %s1125_s25 = smov (!%p240_p6, %s752_s25), 31 }
   0xf   : > { %s753_s26 = sshll.u32 %s1123_s19, 5  ;;  %s755_s27 = sshll.u32 %s1123_s19, 1 }
  0x10   : > { %s243_s28 = sadd.s32 %s753_s26, %s1125_s25  ;;  %s1015_s6 = scalar_lea.vmem %s1111_s5, %s755_s27 }
  0x11   : > { %s754_s7 = sshll.u32 %s243_s28, 2  ;;  %255 = sbr.rel (%p756_p7) target bundleno = 24 (0x18), region = 44 }
  0x12   : > { %s245_s10 = scalar_lea.vmem %s1106_s0, %s754_s7 }
  0x16   : > { %v946_v0 = vmov 0.0  }
  0x17   : > { %256 = vst [vmem:[#allocation2] sm:$0x1] %v946_v0 }
  0x18 PF: > { %v872_v1 = vld [vmem:[%s1107_s1 + $0x8] sm:$0xff]   ;;  %v873_v2 = vld [vmem:[%s1107_s1] sm:$0xff]   ;;  %vm336_vm0 = vcmask 261120   ;;  %v876_v5 = vld [vmem:[%s245_s10 + $0x10] sm:$0xff]   ;;  %p776_p8 = scmp.ne.s32.totalorder %s928_s18, 1 }
  0x19   : > { %805 = vmatprep.subr.bf16.mxu0 %v872_v1  ;;  %v874_v3 = vld [vmem:[%s245_s10] sm:$0xff]   ;;  %825 = vmatprep.subr.bf16.mxu1 %v872_v1  ;;  %v875_v4 = vld [vmem:[%s245_s10 + $0x8] sm:$0xff]   ;;  %v880_v8 = vld [vmem:[%s245_s10 + $0x30] sm:$0xff]  }
  0x1a   : > { %806 = vmatpush3.bf16.msra.mxu0 %v872_v1  ;;  %827 = vmatpush3.bf16.msra.mxu1 %v872_v1  ;;  %v878_v6 = vld [vmem:[%s245_s10 + $0x20] sm:$0xff]   ;;  %v879_v7 = vld [vmem:[%s245_s10 + $0x28] sm:$0xff]   ;;  %v877_v9 = vld [vmem:[%s245_s10 + $0x18] sm:$0xff]  }
  0x1b   : > { %807 = vmatprep.subr.bf16.mxu0 %v873_v2  ;;  %809 = vmatprep.mubr.msk.bf16.mxu0 %vm336_vm0, %v874_v3  ;;  %v881_v10 = vld [vmem:[%s245_s10 + $0x38] sm:$0xff]   ;;  %v757_v15 = vld [vmem:[%s1108_s2] ss:$0 sm:$0xff] }
  0x1c   : > { %826 = vmatprep.subr.bf16.mxu1 %v873_v2  ;;  %817 = vmatprep.mubr.msk.bf16.mxu1 %vm336_vm0, %v878_v6 }
  0x1e   : > { %808 = vmatpush3.bf16.msra.mxu0 %v873_v2  ;;  %828 = vmatpush3.bf16.msra.mxu1 %v873_v2 }
  0x21   : > { %810 = vmatmul.mubr.msk.bf16.vlgmr.msra.gmra.mxu0 %vm336_vm0, %v875_v4  ;;  %818 = vmatmul.mubr.msk.bf16.vlgmr.msra.gmra.mxu1 %vm336_vm0, %v879_v7 }
  0x22   : > { %813 = vmatprep.mubr.msk.bf16.mxu0 %vm336_vm0, %v876_v5  ;;  %821 = vmatprep.mubr.msk.bf16.mxu1 %vm336_vm0, %v880_v8 }
  0x29   : > { %814 = vmatmul.mubr.msk.bf16.gmra.mxu0 %vm336_vm0, %v877_v9  ;;  %822 = vmatmul.mubr.msk.bf16.gmra.mxu1 %vm336_vm0, %v881_v10 }
  0xe1   : > { %v811_v11 = vpop.f32.mrf.mxu0  ;;  %v819_v12 = vpop.f32.mrf.mxu1 }
  0xe2   : > { %v404_v20 = vadd.f32 %v811_v11, %v757_v15  ;;  %v436_v51 = vadd.f32 %v819_v12, %v757_v15 }
  0xe3   : > { %v395_v13 = vpop.f32.mrf.mxu0  ;;  %v427_v14 = vpop.f32.mrf.mxu1 }
  0xe4   : > { %v396_v17 = vadd.f32 %v757_v15, %v395_v13  ;;  %v460_v28 = vmax.f32 %v404_v20, 0.0  ;;  %v428_v45 = vadd.f32 %v757_v15, %v427_v14  ;;  %v468_v58 = vmax.f32 %v436_v51, 0.0 }
  0xe5   : > { %v812_v16 = vpop.f32.mrf.mxu0  ;;  %v820_v19 = vpop.f32.mrf.mxu1 }
  0xe6   : > { %v458_v23 = vmax.f32 %v396_v17, 0.0  ;;  %v407_v24 = vadd.f32 %v812_v16, %v757_v15  ;;  %v466_v52 = vmax.f32 %v428_v45, 0.0  ;;  %v439_v54 = vadd.f32 %v820_v19, %v757_v15  ;;  %v474_v17 = vld [vmem:[#allocation2] sm:$0x1] }
  0xe7   : > { %v398_v18 = vpop.f32.mrf.mxu0  ;;  %v430_v27 = vpop.f32.mrf.mxu1 }
  0xe8   : > { %v399_v21 = vadd.f32 %v757_v15, %v398_v18  ;;  %v461_v32 = vmax.f32 %v407_v24, 0.0  ;;  %v431_v49 = vadd.f32 %v757_v15, %v430_v27  ;;  %v469_v61 = vmax.f32 %v439_v54, 0.0 }
  0xe9   : > { %v815_v22 = vpop.f32.mrf.mxu0  ;;  %v823_v35 = vpop.f32.mrf.mxu1 }
  0xea   : > { %v459_v25 = vmax.f32 %v399_v21, 0.0  ;;  %v420_v36 = vadd.f32 %v815_v22, %v757_v15  ;;  %v467_v55 = vmax.f32 %v431_v49, 0.0  ;;  %v452_v0 = vadd.f32 %v823_v35, %v757_v15 }
  0xeb   : > { %v411_v26 = vpop.f32.mrf.mxu0  ;;  %v443_v43 = vpop.f32.mrf.mxu1 }
  0xec   : > { %v475_v29 = vadd.f32 %v459_v25, %v458_v23  ;;  %v412_v30 = vadd.f32 %v757_v15, %v411_v26  ;;  %v464_v44 = vmax.f32 %v420_v36, 0.0  ;;  %v444_v60 = vadd.f32 %v757_v15, %v443_v43 }
  0xed   : > { %v816_v31 = vpop.f32.mrf.mxu0  ;;  %v824_v50 = vpop.f32.mrf.mxu1  ;;  %v472_v6 = vmax.f32 %v452_v0, 0.0 }
  0xee   : > { %v476_v33 = vadd.f32 %v475_v29, %v460_v28  ;;  %v462_v37 = vmax.f32 %v412_v30, 0.0  ;;  %v423_v41 = vadd.f32 %v816_v31, %v757_v15  ;;  %v470_v1 = vmax.f32 %v444_v60, 0.0 }
  0xef   : > { %v414_v34 = vpop.f32.mrf.mxu0  ;;  %v446_v57 = vpop.f32.mrf.mxu1  ;;  %v455_v4 = vadd.f32 %v824_v50, %v757_v15 }
  0xf0   : > { %v477_v38 = vadd.f32 %v476_v33, %v461_v32  ;;  %v415_v39 = vadd.f32 %v757_v15, %v414_v34  ;;  %v465_v47 = vmax.f32 %v423_v41, 0.0  ;;  %v447_v63 = vadd.f32 %v757_v15, %v446_v57 }
  0xf1   : > { %v473_v8 = vmax.f32 %v455_v4, 0.0 }
  0xf2   : > { %v478_v40 = vadd.f32 %v477_v38, %v462_v37  ;;  %v463_v42 = vmax.f32 %v415_v39, 0.0  ;;  %v471_v5 = vmax.f32 %v447_v63, 0.0 }
  0xf4   : > { %v479_v46 = vadd.f32 %v478_v40, %v463_v42 }
  0xf6   : > { %v480_v48 = vadd.f32 %v479_v46, %v464_v44 }
  0xf8   : > { %v481_v53 = vadd.f32 %v480_v48, %v465_v47 }
  0xfa   : > { %v482_v56 = vadd.f32 %v481_v53, %v466_v52 }
  0xfc   : > { %v483_v59 = vadd.f32 %v482_v56, %v467_v55 }
  0xfe   : > { %v484_v62 = vadd.f32 %v483_v59, %v468_v58 }
 0x100   : > { %v485_v2 = vadd.f32 %v484_v62, %v469_v61 }
 0x102   : > { %v486_v3 = vadd.f32 %v485_v2, %v470_v1 }
 0x104   : > { %v487_v7 = vadd.f32 %v486_v3, %v471_v5 }
 0x106   : > { %v488_v9 = vadd.f32 %v487_v7, %v472_v6 }
 0x108   : > { %v489_v10 = vadd.f32 %v488_v9, %v473_v8 }
 0x10a   : > { %v490_v11 = vrot.slane %v489_v10, 4 }
 0x10c   : > { %v491_v12 = vadd.f32 %v490_v11, %v489_v10 }
 0x10e   : > { %v492_v13 = vrot.slane %v491_v12, 2 }
 0x110   : > { %v493_v14 = vadd.f32 %v492_v13, %v491_v12 }
 0x112   : > { %v494_v16 = vrot.slane %v493_v14, 1 }
 0x114   : > { %v495_v18 = vadd.f32 %v494_v16, %v493_v14  ;;  %501 = sbr.rel (%p776_p8) target bundleno = 518 (0x206), region = 48 }
 0x116   : > { %v496_v19 = vadd.f32 %v495_v18, %v474_v17 }
 0x118   : > { %497 = vst [vmem:[#allocation2] sm:$0x1] %v496_v19 }
 0x119   : > { %v882_v15 = vld [vmem:[%s1109_s3 + $0x74] ss:$8 sps:$4 sm:$0xff]   ;;  %v884_v20 = vld [vmem:[%s1109_s3 + $0x70] ss:$8 sps:$4 sm:$0xff]   ;;  %v947_v21 = vmov 0   ;;  %v603_v39 = vlaneseq }
 0x11a   : > { %645 = vmatprep.mubr.bf16.mxu0 %v947_v21  ;;  %613 = vmatprep.subr.bf16.mxu0 %v882_v15  ;;  %v885_v22 = vld [vmem:[%s1109_s3 + $0x64] ss:$8 sps:$4 sm:$0xff]   ;;  %v887_v23 = vld [vmem:[%s1109_s3 + $0x60] ss:$8 sps:$4 sm:$0xff]   ;;  %v888_v24 = vld [vmem:[%s1109_s3 + $0x54] ss:$8 sps:$4 sm:$0xff]  }
 0x11b   : > { %614 = vmatpush1.bf16.msra.mxu0 %v884_v20  ;;  %v890_v25 = vld [vmem:[%s1109_s3 + $0x50] ss:$8 sps:$4 sm:$0xff]   ;;  %v891_v26 = vld [vmem:[%s1109_s3 + $0x44] ss:$8 sps:$4 sm:$0xff]   ;;  %v893_v27 = vld [vmem:[%s1109_s3 + $0x40] ss:$8 sps:$4 sm:$0xff]  }
 0x11c   : > { %615 = vmatprep.subr.bf16.mxu0 %v885_v22  ;;  %v894_v28 = vld [vmem:[%s1109_s3 + $0x34] ss:$8 sps:$4 sm:$0xff]   ;;  %v896_v29 = vld [vmem:[%s1109_s3 + $0x30] ss:$8 sps:$4 sm:$0xff]   ;;  %v897_v30 = vld [vmem:[%s1109_s3 + $0x24] ss:$8 sps:$4 sm:$0xff]  }
 0x11d   : > { %v899_v31 = vld [vmem:[%s1109_s3 + $0x20] ss:$8 sps:$4 sm:$0xff]   ;;  %v900_v32 = vld [vmem:[%s1109_s3 + $0x14] ss:$8 sps:$4 sm:$0xff]   ;;  %v902_v33 = vld [vmem:[%s1109_s3 + $0x10] ss:$8 sps:$4 sm:$0xff]  }
 0x11e   : > { %v903_v35 = vld [vmem:[%s1109_s3 + $0x4] ss:$8 sps:$4 sm:$0xff]   ;;  %v905_v37 = vld [vmem:[%s1109_s3] ss:$8 sps:$4 sm:$0xff]   ;;  %v604_v40 = vshrl.u32 %v603_v39, 7  ;;  %vm674_vm1 = vcmp.lt.s32.totalorder %v603_v39, 256 }
 0x11f   : > { %616 = vmatpush1.bf16.msra.mxu0 %v887_v23  ;;  %v502_v34 = vld [vmem:[#allocation2] sm:$0x1]  ;;  %v948_v43 = vmov 1966171168  }
 0x120   : > { %617 = vmatprep.subr.bf16.mxu0 %v888_v24  ;;  %v503_v36 = vmul.f32 0.00390625, %v502_v34  ;;  %v605_v41 = vsub.s32 0, %v604_v40  ;;  %v609_v42 = vsub.s32 1, %v604_v40  ;;  %v658_v44 = vunpack.c.l.s4 %v948_v43  ;;  %v521_v45 = vld [vmem:[%s1110_s4] sm:$0x3] }
 0x122   : > { %v504_v38 = vpack.c.bf16 %v503_v36, %v503_v36  ;;  %v606_v46 = vrot.slane %v521_v45, %v605_v41  ;;  %v610_v47 = vrot.slane %v521_v45, %v609_v42  ;;  %v659_v48 = vunpack.c.0.s8 %v658_v44 }
 0x123   : > { %618 = vmatpush1.bf16.msra.mxu0 %v890_v25 }
 0x124   : > { %619 = vmatprep.subr.bf16.mxu0 %v891_v26  ;;  %v662_v53 = vsub.s32 %v659_v48, %v604_v40 }
 0x127   : > { %620 = vmatpush1.bf16.msra.mxu0 %v893_v27 }
 0x128   : > { %621 = vmatprep.subr.bf16.mxu0 %v894_v28 }
 0x12b   : > { %622 = vmatpush1.bf16.msra.mxu0 %v896_v29 }
 0x12c   : > { %623 = vmatprep.subr.bf16.mxu0 %v897_v30 }
 0x12f   : > { %624 = vmatpush1.bf16.msra.mxu0 %v899_v31 }
 0x130   : > { %625 = vmatprep.subr.bf16.mxu0 %v900_v32 }
 0x133   : > { %626 = vmatpush1.bf16.msra.mxu0 %v902_v33 }
 0x134   : > { %627 = vmatprep.subr.bf16.mxu0 %v903_v35 }
 0x137   : > { %628 = vmatpush1.bf16.msra.mxu0 %v905_v37 }
 0x13a   : > { %646 = vmatmul.mubr.bf16.vlgmr.msra.gmra.mxu0 %v504_v38 }
 0x1fa   : > { %v647_v49 = vpop.f32.mrf.mxu0 }
 0x1fb   : > { %v648_v51 = vadd.f32 %v647_v49, %v606_v46 }
 0x1fc   : > { %v649_v50 = vpop.f32.mrf.mxu0 }
 0x1fd   : > { %v650_v52 = vadd.f32 %v649_v50, %v610_v47 }
 0x1fe   : > { %v651_v54 = vpop.f32.mrf.mxu0 }
 0x1ff   : > { %v656_v55 = vcombine.low %v648_v51, %v650_v52 }
 0x200   : > { %v652_v56 = vpop.f32.mrf.mxu0 }
 0x201   : > { %v663_v57 = vrot.slane %v656_v55, %v662_v53 }
 0x203   : > { %v670_v58 = vrot.slane %v663_v57, %v662_v53 }
 0x205   : > { %676 = vst.msk [vmem:[%s1015_s6] sm:$0x3] %vm674_vm1, %v670_v58 }
 0x206 PF: > { %s15_s22 = sadd.s32 1, %s944_s22   ;;  %s1112_s18 = smov %s936_s20 }
 0x207   : > { %p12_p9 = scmp.ge.s32.totalorder %s15_s22, 6   ;;  %s1113_s19 = smov %s940_s21 }
 0x208   : > { %s1114_s20 = smov %s1117_s23  ;;  %s1115_s21 = smov %s1121_s24 }
 0x209   :  { %14 = sbr.rel (!%p12_p9) target bundleno = 3 (0x3), region = 78 }

</bundles_post_ra>
